<compile_context>
chip_gen: v5e
topology: v5e:2x2
jax: 0.10.0
libtpu: 0.0.40
codegen_flags: <defaults>
</compile_context>

<pallas_src>
import functools
import math

import numpy as np
import jax
import jax.numpy as jnp
from jax import lax
from jax.experimental import pallas as pl
from jax.experimental.pallas import tpu as pltpu


def _round_up(a, b):
    return ((a + b - 1) // b) * b


def _round_down(a, b):
    return (a // b) * b


# --------------------------------------------------------------------------
# Kernel: one grid step sees a (TN, dim) slab of x and emits a (1, TN) LSE row.
# --------------------------------------------------------------------------
_TRANS_B = (((1,), (1,)), ((), ()))  # contract last dims: (Kp,d) x (tc,d) -> (Kp,tc)


def gmm_kernel(x_ref, w2_ref, nhb_ref, bias_ref, o_ref, *, tc):
    # x_ref:    (TN, dim)  data points, natural layout (f32 or bf16)
    # w2_ref:   (Kp, dim)  2 * mean * halfbeta               (padded rows = 0)
    # nhb_ref:  (Kp, dim)  -halfbeta broadcast over dim      (padded rows = 0)
    # bias_ref: (Kp, 1)    per-component constants + prior   (padded rows = -inf)
    # o_ref:    (1, TN)    logsumexp over components, lane-dense
    w2 = w2_ref[...]
    nhb = nhb_ref[...]
    bias = bias_ref[...]
    nchunks = x_ref.shape[0] // tc  # static: TN is a multiple of tc

    def body(c, carry):
        start = pl.multiple_of(c * tc, tc)
        xc = x_ref[pl.ds(start, tc), :].astype(jnp.float32)            # (tc, dim)
        # Two tiny MXU matmuls, contracting over dim; points stay on lanes.
        cross = lax.dot_general(w2, xc, _TRANS_B,
                                preferred_element_type=jnp.float32)    # (Kp, tc)
        quad = lax.dot_general(nhb, xc * xc, _TRANS_B,
                               preferred_element_type=jnp.float32)     # (Kp, tc)
        logits = cross + quad + bias                                   # (Kp, tc)
        # stable logsumexp over components (sublane axis) -> lane-dense row
        m = jnp.max(logits, axis=0, keepdims=True)                     # (1, tc)
        lse = m + jnp.log(jnp.sum(jnp.exp(logits - m), axis=0, keepdims=True))
        o_ref[:, pl.ds(start, tc)] = lse
        return carry

    lax.fori_loop(0, nchunks, body, 0)


# --------------------------------------------------------------------------
# Priors (match the torch module's defaults)
# --------------------------------------------------------------------------
def _gaussian_log_prob(x, mean, stddev):
    # torch.distributions.Normal(mean, stddev).log_prob(x)
    return (-jnp.log(stddev)
            - 0.5 * math.log(2.0 * math.pi)
            - 0.5 * jnp.square((x - mean) / stddev))


def _prior(mean, logbeta, weight, *, Nmix, alpha, mean_init, sd_init):
    # GaussianMixture.prior() for the default construction.
    p = math.lgamma(Nmix * alpha) - Nmix * math.lgamma(alpha)  # dirichlet_constant
    if alpha != 1:
        p = p + (alpha - 1.0) * jnp.sum(jnp.log(jax.nn.softmax(weight)))
    p = p + jnp.sum(_gaussian_log_prob(mean, mean_init[0], mean_init[1]))
    lb_mu = -2.0 * math.log(sd_init[0])
    p = p + jnp.sum(_gaussian_log_prob(logbeta, lb_mu, sd_init[1]))
    return p


def _vmem_capacity_bytes():
    try:
        info = pltpu.get_tpu_info()
        cap = int(getattr(info, "vmem_capacity_bytes", 0))
        if cap > 0:
            return cap
    except Exception:
        pass
    return 64 * 1024 * 1024  # conservative: v7x per-TensorCore physical VMEM


# --------------------------------------------------------------------------
# Wrapper
# --------------------------------------------------------------------------
def gmm_forward_pallas(x, mean, logbeta, weight, *, alpha=1,
                       mean_init=(0.0, 1.0), sd_init=(0.5, 0.5),
                       tn=None, tc=512):
    """Pallas GaussianMixture.forward (type='isotropic').

    x is streamed exactly as given, shape (N, dim); pass bf16 x to halve HBM
    traffic (in-kernel math is always f32).  Returns shape (N,) log-likelihoods
    (prior included), matching the torch forward.
    """
    x = jnp.asarray(x)
    if x.dtype not in (jnp.float32, jnp.bfloat16):
        x = x.astype(jnp.float32)
    N, dim = x.shape
    Nmix = mean.shape[0]

    mean = jnp.asarray(mean, jnp.float32)
    logbeta = jnp.asarray(logbeta, jnp.float32)
    weight = jnp.asarray(weight, jnp.float32)

    # TODO(synk): only type='isotropic' (logbeta shape (Nmix,1)) is implemented;
    # 'diagonal' would reuse the same kernel with per-dim halfbeta in w2/nhb.
    pi_term = -0.5 * dim * math.log(2.0 * math.pi)
    betafactor = 0.5 * dim

    halfbeta = 0.5 * jnp.exp(logbeta)                       # (Nmix, 1)
    w2 = 2.0 * mean * halfbeta                              # (Nmix, dim)
    nhb = -jnp.broadcast_to(halfbeta, (Nmix, dim))          # (Nmix, dim)
    csq = jnp.sum(mean * mean * halfbeta, axis=-1)          # (Nmix,)

    prior = _prior(mean, logbeta, weight, Nmix=Nmix, alpha=alpha,
                   mean_init=mean_init, sd_init=sd_init)

    bias = (pi_term
            + betafactor * jnp.sum(logbeta, axis=-1)
            + jax.nn.log_softmax(weight)
            - csq
            + prior)                                        # (Nmix,), prior folded in

    # Pad components to a sublane multiple; padded rows contribute exp(-inf)=0.
    Kp = _round_up(Nmix, 8)
    w2 = jnp.pad(w2, ((0, Kp - Nmix), (0, 0))).astype(jnp.float32)
    nhb = jnp.pad(nhb, ((0, Kp - Nmix), (0, 0))).astype(jnp.float32)
    bias = jnp.pad(bias, (0, Kp - Nmix),
                   constant_values=-jnp.inf).reshape(Kp, 1).astype(jnp.float32)

    # ---- tiny-N fallback: make sure at least one full 128-row chunk exists --
    if N < 128:
        x = jnp.pad(x, ((0, 128 - N), (0, 0)))
    Nr = int(x.shape[0])

    tc = int(tc)
    tc = tc if Nr >= tc else 128
    tc = max(128, _round_down(tc, 128))

    # ---- per-chip VMEM-derived row tile --------------------------------------
    item = jnp.dtype(x.dtype).itemsize
    lanes = _round_up(dim, 128)                 # VMEM lane padding of the x tile
    per_row = 2 * lanes * item + 2 * 8 * 4      # 2x x buffers + 2x (8,tn) f32 out bufs
    reserve = 2 * 1024 * 1024 + 4 * tc * lanes * 4   # chunk temporaries + constants
    vmem_cap = _vmem_capacity_bytes()
    budget = min(int(vmem_cap * 0.55), 40 * 1024 * 1024)

    if tn is None:
        tn = max(tc, _round_down(max(0, budget - reserve) // per_row, tc))
        # keep >= 4 grid steps when there is enough data (2 TCs x dbl-buffer on v7x)
        tn = min(tn, max(tc, _round_up(pl.cdiv(Nr, 4), tc)))
    tn = max(tc, _round_down(int(tn), tc))
    tn = min(tn, _round_down(Nr, tc))           # block never exceeds the array
    grid = pl.cdiv(Nr, tn)

    cp_kwargs = dict(dimension_semantics=("parallel",))
    need = per_row * tn + reserve
    if need > 12 * 1024 * 1024:
        cp_kwargs["vmem_limit_bytes"] = int(
            min(need + 8 * 1024 * 1024, vmem_cap - 12 * 1024 * 1024))

    y = pl.pallas_call(
        functools.partial(gmm_kernel, tc=tc),
        out_shape=jax.ShapeDtypeStruct((1, Nr), jnp.float32),
        grid_spec=pltpu.PrefetchScalarGridSpec(
            num_scalar_prefetch=0,
            grid=(grid,),
            in_specs=[
                pl.BlockSpec((tn, dim), lambda i: (i, 0)),   # x slab, natural layout
                pl.BlockSpec((Kp, dim), lambda i: (0, 0)),   # 2*mu*hb
                pl.BlockSpec((Kp, dim), lambda i: (0, 0)),   # -hb broadcast over dim
                pl.BlockSpec((Kp, 1), lambda i: (0, 0)),     # bias column (+prior)
            ],
            out_specs=pl.BlockSpec((1, tn), lambda i: (0, i)),
        ),
        compiler_params=pltpu.CompilerParams(**cp_kwargs),
    )(x, w2, nhb, bias)

    return y[0, :N]


# --------------------------------------------------------------------------
# Pure-JAX reference (mirrors the torch forward exactly)
# --------------------------------------------------------------------------
def gmm_forward_ref(x, mean, logbeta, weight, *, alpha=1,
                    mean_init=(0.0, 1.0), sd_init=(0.5, 0.5)):
    Nmix, dim = mean.shape
    pi_term = -0.5 * dim * math.log(2.0 * math.pi)
    betafactor = 0.5 * dim
    halfbeta = 0.5 * jnp.exp(logbeta)                        # (Nmix, 1)
    diff2 = jnp.square(x[:, None, :] - mean[None, :, :])     # (N, Nmix, dim)
    y = pi_term - jnp.sum(diff2 * halfbeta[None], axis=-1) \
        + betafactor * jnp.sum(logbeta, axis=-1)
    y = y + jax.nn.log_softmax(weight)
    y = jax.scipy.special.logsumexp(y, axis=-1)
    return y + _prior(mean, logbeta, weight, Nmix=Nmix, alpha=alpha,
                      mean_init=mean_init, sd_init=sd_init)


# --------------------------------------------------------------------------
if __name__ == "__main__":
    Nmix, dim, N = 8, 16, 2048
    sd_init = (0.5, 0.5)

    key = jax.random.PRNGKey(0)
    k_mean, k_x = jax.random.split(key)

    # init_params(): mean ~ Normal(0,1); logbeta = -2*log(sd_init[0]); weight = 1
    mean = (0.0 + 1.0 * jax.random.normal(k_mean, (Nmix, dim))).astype(jnp.float32)
    logbeta = jnp.full((Nmix, 1), -2.0 * math.log(sd_init[0]), dtype=jnp.float32)
    weight = jnp.ones((Nmix,), dtype=jnp.float32)

    x = jax.random.normal(k_x, (N, dim), dtype=jnp.float32)

    # f32 streaming path
    y_ref = jax.block_until_ready(gmm_forward_ref(x, mean, logbeta, weight))
    y = jax.block_until_ready(gmm_forward_pallas(x, mean, logbeta, weight))
    assert y.shape == (N,)
    assert np.allclose(np.asarray(y), np.asarray(y_ref), rtol=1e-5, atol=1e-2), \
        (np.asarray(y)[:4], np.asarray(y_ref)[:4])

    # ragged N (not a multiple of the tile / chunk): exercises Pallas edge blocking
    N2 = 1000
    x2 = x[:N2]
    y2_ref = jax.block_until_ready(gmm_forward_ref(x2, mean, logbeta, weight))
    y2 = jax.block_until_ready(gmm_forward_pallas(x2, mean, logbeta, weight))
    assert y2.shape == (N2,)
    assert np.allclose(np.asarray(y2), np.asarray(y2_ref), rtol=1e-5, atol=1e-2), \
        (np.asarray(y2)[:4], np.asarray(y2_ref)[:4])

    # bf16-streamed x (caller provides bf16; kernel math stays f32).  Compared
    # against the reference on the SAME quantized x so the check isolates kernel
    # error from input quantization (tight tolerance, not a no-op check).
    xb = x.astype(jnp.bfloat16)
    y16 = jax.block_until_ready(gmm_forward_pallas(xb, mean, logbeta, weight))
    y16_ref = jax.block_until_ready(
        gmm_forward_ref(xb.astype(jnp.float32), mean, logbeta, weight))
    assert np.allclose(np.asarray(y16), np.asarray(y16_ref), rtol=1e-5, atol=1e-2), \
        (np.asarray(y16)[:4], np.asarray(y16_ref)[:4])

    print("KERNEL_OK")
</pallas_src>

<mosaic_0001>
module attributes {stable_mosaic.version = 11 : i64} {
  func.func @gmm_kernel(%arg0: i32, %arg1: memref<512x16xf32, #tpu.memory_space<vmem>>, %arg2: memref<8x16xf32, #tpu.memory_space<vmem>>, %arg3: memref<8x16xf32, #tpu.memory_space<vmem>>, %arg4: memref<8x1xf32, #tpu.memory_space<vmem>>, %arg5: memref<1x512xf32, #tpu.memory_space<vmem>>) attributes {dimension_semantics = [#tpu.dimension_semantics<parallel>], iteration_bounds = array<i64: 4>, scalar_prefetch = 0 : i64, scratch_operands = 0 : i64, tpu.core_type = #tpu.core_type<tc>, window_params = [{transform_indices = @transform_0, window_bounds = array<i64: 512, 16>}, {pipeline_mode = #tpu.pipeline_mode<synchronous>, transform_indices = @transform_1, window_bounds = array<i64: 8, 16>}, {pipeline_mode = #tpu.pipeline_mode<synchronous>, transform_indices = @transform_2, window_bounds = array<i64: 8, 16>}, {pipeline_mode = #tpu.pipeline_mode<synchronous>, transform_indices = @transform_3, window_bounds = array<i64: 8, 1>}, {transform_indices = @transform_4, window_bounds = array<i64: 1, 512>}]} {
    %c0 = arith.constant 0 : index
    %c0_0 = arith.constant 0 : index
    %0 = vector.load %arg2[%c0, %c0_0] : memref<8x16xf32, #tpu.memory_space<vmem>>, vector<8x16xf32>
    %c0_1 = arith.constant 0 : index
    %c0_2 = arith.constant 0 : index
    %1 = vector.load %arg3[%c0_1, %c0_2] : memref<8x16xf32, #tpu.memory_space<vmem>>, vector<8x16xf32>
    %c0_3 = arith.constant 0 : index
    %c0_4 = arith.constant 0 : index
    %2 = vector.load %arg4[%c0_3, %c0_4] : memref<8x1xf32, #tpu.memory_space<vmem>>, vector<8x1xf32>
    %c0_i32 = arith.constant 0 : i32
    %c512_i32 = arith.constant 512 : i32
    %3 = arith.muli %c0_i32, %c512_i32 : i32
    %4 = tpu.assume_multiple %3, 512 : i32
    %5 = arith.index_cast %4 : i32 to index
    %c0_5 = arith.constant 0 : index
    %6 = vector.load %arg1[%5, %c0_5] : memref<512x16xf32, #tpu.memory_space<vmem>>, vector<512x16xf32>
    %cst = arith.constant dense<0.000000e+00> : vector<8x512xf32>
    %7 = tpu.matmul %0, %6, %cst {dimension_numbers = #tpu.dot_dimension_numbers<[1], [1], [0], [0], [0, 0, 1, 0], [], []>} : vector<8x16xf32>, vector<512x16xf32>, vector<8x512xf32> -> vector<8x512xf32>
    %8 = arith.mulf %6, %6 : vector<512x16xf32>
    %cst_6 = arith.constant dense<0.000000e+00> : vector<8x512xf32>
    %9 = tpu.matmul %1, %8, %cst_6 {dimension_numbers = #tpu.dot_dimension_numbers<[1], [1], [0], [0], [0, 0, 1, 0], [], []>} : vector<8x16xf32>, vector<512x16xf32>, vector<8x512xf32> -> vector<8x512xf32>
    %10 = arith.addf %7, %9 : vector<8x512xf32>
    %11 = vector.broadcast %2 : vector<8x1xf32> to vector<8x512xf32>
    %12 = arith.addf %10, %11 : vector<8x512xf32>
    %cst_7 = arith.constant dense<0xFF800000> : vector<512xf32>
    %13 = vector.multi_reduction <maximumf>, %12, %cst_7 [0] : vector<8x512xf32> to vector<512xf32>
    %14 = vector.shape_cast %13 : vector<512xf32> to vector<1x512xf32>
    %15 = vector.broadcast %14 : vector<1x512xf32> to vector<8x512xf32>
    %16 = arith.subf %12, %15 : vector<8x512xf32>
    %17 = math.exp %16 : vector<8x512xf32>
    %cst_8 = arith.constant dense<0.000000e+00> : vector<512xf32>
    %18 = vector.multi_reduction <add>, %17, %cst_8 [0] : vector<8x512xf32> to vector<512xf32>
    %19 = vector.shape_cast %18 : vector<512xf32> to vector<1x512xf32>
    %20 = math.log %19 : vector<1x512xf32>
    %21 = arith.addf %14, %20 : vector<1x512xf32>
    %c0_9 = arith.constant 0 : index
    %22 = arith.index_cast %4 : i32 to index
    %23 = vector.load %arg5[%c0_9, %22] : memref<1x512xf32, #tpu.memory_space<vmem>>, vector<1x512xf32>
    tpu.vector_store %arg5[%c0_9, %22], %21 {strides = array<i32>} : memref<1x512xf32, #tpu.memory_space<vmem>>, vector<1x512xf32>,
    %c1_i32 = arith.constant 1 : i32
    return
  }
  func.func @transform_0(%arg0: i32) -> (i32, i32) {
    %c0_i32 = arith.constant 0 : i32
    %c0_i32_0 = arith.constant 0 : i32
    return %arg0, %c0_i32 : i32, i32
  }
  func.func @transform_1(%arg0: i32) -> (i32, i32) {
    %c0_i32 = arith.constant 0 : i32
    %c0_i32_0 = arith.constant 0 : i32
    %c0_i32_1 = arith.constant 0 : i32
    return %c0_i32, %c0_i32_0 : i32, i32
  }
  func.func @transform_2(%arg0: i32) -> (i32, i32) {
    %c0_i32 = arith.constant 0 : i32
    %c0_i32_0 = arith.constant 0 : i32
    %c0_i32_1 = arith.constant 0 : i32
    return %c0_i32, %c0_i32_0 : i32, i32
  }
  func.func @transform_3(%arg0: i32) -> (i32, i32) {
    %c0_i32 = arith.constant 0 : i32
    %c0_i32_0 = arith.constant 0 : i32
    %c0_i32_1 = arith.constant 0 : i32
    return %c0_i32, %c0_i32_0 : i32, i32
  }
  func.func @transform_4(%arg0: i32) -> (i32, i32) {
    %c0_i32 = arith.constant 0 : i32
    %c0_i32_0 = arith.constant 0 : i32
    return %c0_i32, %arg0 : i32, i32
  }
}

</mosaic_0001>

<bundles_post_ra>
// kernel: tpu_custom_call.1
= control target key start
LH: loop header
LB: loop body
LE: loop exit
PB: predicated region body
PF: predicated region fallthrough
CT: control target
= control target key end

     0   :  { %9 = vsyncpa [#allocation3], 0  ;;  %s1973_s0 = inlined_call_operand.vmem [shape: f32[2048,16], index: 0, kind: input, shape index: {}]   ;;  %s1974_s1 = inlined_call_operand.vmem [shape: f32[8,16], index: 1, kind: input, shape index: {}]   ;;  %s1975_s2 = inlined_call_operand.vmem [shape: f32[8,16], index: 2, kind: input, shape index: {}]   ;;  %s1976_s3 = inlined_call_operand.vmem [shape: f32[8,1], index: 3, kind: input, shape index: {}]   ;;  %s1977_s4 = inlined_call_operand.hbm [shape: f32[1,2048], index: 4, kind: output, shape index: {}]  }
   0x1   :  { %11 = vsyncpa [#allocation3 + $0x1], 0  ;;  %s1350_s15 = smov 0   ;;  %s1352_s16 = smov 0  }
   0x2   :  { %s1354_s17 = smov 0   ;;  %s1356_s18 = smov 0  }
   0x3 LB: > { %s1371_s19 = sadd.s32 4294967295, %s1322_s18   ;;  %s1056_s20 = sadd.s32 4294967294, %s1322_s18   ;;  %s1322_s18 = sphi %s1356_s18, %s2007_s18   ;;  %s1318_s17 = sphi %s1354_s17, %s2006_s17   ;;  %s1314_s16 = sphi %s1352_s16, %s2005_s16   ;;  %s1310_s15 = sphi %s1350_s15, %s2004_s15  }
   0x4   : > { %s1375_s21 = sadd.s32 1, %s1322_s18   ;;  %s113_s22 = sadd.s32 1, %s1318_s17 }
   0x5   : > { %s110_s23 = ssub.s32 %s1322_s18, %s1375_s21  ;;  %p123_p0 = scmp.ne.s32.totalorder %s1318_s17, %s1314_s16 }
   0x6   : > { %p111_p1 = scmp.eq.s32.totalorder %s110_s23, 0  ;;  %p124_p2 = scmp.eq.s32.totalorder %s1371_s19, 3 }
   0x7   : > { %p129_p3 = scmp.ne.s32.totalorder %s1314_s16, %s1310_s15  ;;  %p130_p4 = scmp.eq.s32.totalorder %s1056_s20, 3 }
   0x8   : > { %s1386_s24 = scalar_select %p111_p1, %s1318_s17, %s113_s22  }
   0x9   : > { %p1388_p5 = por %p124_p2, %p123_p0  ;;  %p1392_p6 = por %p130_p4, %p129_p3 }
   0xa   : > { %p1059_p7 = scmp.ge.s32.totalorder %s1322_s18, 1  ;;  %p166_p8 = scmp.lt.s32.totalorder %s1322_s18, 5 }
   0xc   : > { %p167_p9 = pnand %p1059_p7, %p166_p8 }
   0xe   : > { %170 = sbr.rel (%p167_p9) target bundleno = 347 (0x15b), region = 36 }
  0x13   : > { %s1061_s27 = sshll.u32 %s1371_s19, 6  ;;  %vm330_vm0 = vcmask 130048   ;;  %s189_s12 = sand.u32 1, %s1314_s16   ;;  %vm969_vm1 = vcmask 1040384   ;;  %vm971_vm2 = vcmask 1042434   ;;  %vm973_vm3 = vcmask 1041408  }
  0x14   : > { %p193_p10 = scmp.lt.s32.totalorder %s1061_s27, 255  ;;  %s1060_s13 = sshll.u32 %s189_s12, 2 }
  0x15   : > { %s1200_s14 = sshll.u32 %s1371_s19, 2  ;;  %s982_s29 = scalar_lea.sflag [#allocation3], %s189_s12 }
  0x16   : > { %s2009_s27 = smov (!%p193_p10, %s1061_s27), 255  ;;  %s992_s23 = scalar_lea.hbm %s1977_s4, %s1200_s14 }
  0x17   : > { %s1062_s28 = sshll.u32 %s2009_s27, 3  ;;  %s191_s27 = scalar_lea.vmem [#allocation2], %s1060_s13 }
  0x18   : > { %s1402_s5 = scalar_lea.vmem %s1973_s0, %s1062_s28  ;;  %s994_s19 = sshll.u32 %s191_s27, 4  ;;  %s995_s19 = int_to_ptr.vmem [resolvable:$true] %s994_s19 }
  0x19   : > { %v1405_v0 = vld [vmem:[%s1402_s5 + $0x78] sm:$0xff]  ;;  %v1423_v7 = vld [vmem:[%s1402_s5 + $0x70] sm:$0xff]  ;;  %v1449_v16 = vld [vmem:[%s1402_s5 + $0x68] sm:$0xff]  ;;  %s996_s28 = sshll.u32 %s992_s23, 4  ;;  %s1280_s8 = scalar_lea.hbm %s1977_s4, 16  ;;  %s997_s28 = int_to_ptr.hbm [resolvable:$true] %s996_s28 }
  0x1a   : > { %v1408_v1 = vld [vmem:[%s1402_s5 + $0xf8] sm:$0xff]  ;;  %v281_v3 = vmul.f32 %v1405_v0, %v1405_v0  ;;  %v1426_v8 = vld [vmem:[%s1402_s5 + $0xf0] sm:$0xff]  ;;  %v280_v12 = vmul.f32 %v1423_v7, %v1423_v7  ;;  %v1452_v17 = vld [vmem:[%s1402_s5 + $0xe8] sm:$0xff]  ;;  %v279_v20 = vmul.f32 %v1449_v16, %v1449_v16  ;;  %s1274_s30 = sshra.s32 %s997_s28, 4  ;;  %s1275_s30 = int_to_ptr.hbm [resolvable:$true] %s1274_s30 }
  0x1b   : > { %v1411_v2 = vld [vmem:[%s1402_s5 + $0x178] sm:$0xff]  ;;  %v297_v4 = vmul.f32 %v1408_v1, %v1408_v1  ;;  %v1431_v10 = vld [vmem:[%s1402_s5 + $0x170] sm:$0xff]  ;;  %v296_v13 = vmul.f32 %v1426_v8, %v1426_v8  ;;  %v1455_v18 = vld [vmem:[%s1402_s5 + $0x168] sm:$0xff]  ;;  %v295_v21 = vmul.f32 %v1452_v17, %v1452_v17  ;;  %p1281_p0 = scmp.lt.s32.totalorder %s1275_s30, %s1977_s4 }
  0x1c   : > { %v313_v5 = vmul.f32 %v1411_v2, %v1411_v2  ;;  %v1420_v6 = vld [vmem:[%s1402_s5 + $0x1f8] sm:$0xff]  ;;  %v1434_v11 = vld [vmem:[%s1402_s5 + $0x1f0] sm:$0xff]  ;;  %1063 = vmatpush.xpose.msk.msra.mxu0 %vm330_vm0, %v281_v3  ;;  %v312_v14 = vmul.f32 %v1431_v10, %v1431_v10  ;;  %v1458_v19 = vld [vmem:[%s1402_s5 + $0x1e8] sm:$0xff]  ;;  %v311_v22 = vmul.f32 %v1455_v18, %v1455_v18 }
  0x1d   : > { %v329_v9 = vmul.f32 %v1420_v6, %v1420_v6  ;;  %1080 = vmatpush.xpose.msk.msra.mxu1 %vm330_vm0, %v297_v4  ;;  %v328_v15 = vmul.f32 %v1434_v11, %v1434_v11  ;;  %v327_v23 = vmul.f32 %v1458_v19, %v1458_v19  ;;  %v1473_v24 = vld [vmem:[%s1402_s5 + $0x60] sm:$0xff]  ;;  %v1497_v32 = vld [vmem:[%s1402_s5 + $0x58] sm:$0xff]  ;;  %v1521_v40 = vld [vmem:[%s1402_s5 + $0x50] sm:$0xff] }
  0x1e   : > { %1097 = vmatpush.xpose.msk.msra.mxu2 %vm330_vm0, %v313_v5  ;;  %v1476_v25 = vld [vmem:[%s1402_s5 + $0xe0] sm:$0xff]  ;;  %v278_v28 = vmul.f32 %v1473_v24, %v1473_v24  ;;  %v1500_v33 = vld [vmem:[%s1402_s5 + $0xd8] sm:$0xff]  ;;  %v277_v36 = vmul.f32 %v1497_v32, %v1497_v32  ;;  %v1524_v41 = vld [vmem:[%s1402_s5 + $0xd0] sm:$0xff]  ;;  %v276_v44 = vmul.f32 %v1521_v40, %v1521_v40 }
  0x1f   : > { %1114 = vmatpush.xpose.msk.msra.mxu3 %vm330_vm0, %v329_v9  ;;  %v1479_v26 = vld [vmem:[%s1402_s5 + $0x160] sm:$0xff]  ;;  %v294_v29 = vmul.f32 %v1476_v25, %v1476_v25  ;;  %v1503_v34 = vld [vmem:[%s1402_s5 + $0x158] sm:$0xff]  ;;  %v293_v37 = vmul.f32 %v1500_v33, %v1500_v33  ;;  %v1527_v42 = vld [vmem:[%s1402_s5 + $0x150] sm:$0xff]  ;;  %v292_v45 = vmul.f32 %v1524_v41, %v1524_v41 }
  0x20   : > { %1064 = vmatpush.xpose.msk.msra.mxu0 %vm330_vm0, %v280_v12  ;;  %v1482_v27 = vld [vmem:[%s1402_s5 + $0x1e0] sm:$0xff]  ;;  %v310_v30 = vmul.f32 %v1479_v26, %v1479_v26  ;;  %v1506_v35 = vld [vmem:[%s1402_s5 + $0x1d8] sm:$0xff]  ;;  %v309_v38 = vmul.f32 %v1503_v34, %v1503_v34  ;;  %v1530_v43 = vld [vmem:[%s1402_s5 + $0x1d0] sm:$0xff]  ;;  %v308_v46 = vmul.f32 %v1527_v42, %v1527_v42 }
  0x21   : > { %1081 = vmatpush.xpose.msk.msra.mxu1 %vm330_vm0, %v296_v13  ;;  %v326_v31 = vmul.f32 %v1482_v27, %v1482_v27  ;;  %v325_v39 = vmul.f32 %v1506_v35, %v1506_v35  ;;  %v324_v47 = vmul.f32 %v1530_v43, %v1530_v43  ;;  %v1545_v48 = vld [vmem:[%s1402_s5 + $0x48] sm:$0xff]  ;;  %v1569_v56 = vld [vmem:[%s1402_s5 + $0x40] sm:$0xff]  ;;  %v1593_v3 = vld [vmem:[%s1402_s5 + $0x38] sm:$0xff] }
  0x22   : > { %1098 = vmatpush.xpose.msk.msra.mxu2 %vm330_vm0, %v312_v14  ;;  %v1548_v49 = vld [vmem:[%s1402_s5 + $0xc8] sm:$0xff]  ;;  %v275_v52 = vmul.f32 %v1545_v48, %v1545_v48  ;;  %v1572_v57 = vld [vmem:[%s1402_s5 + $0xc0] sm:$0xff]  ;;  %v274_v60 = vmul.f32 %v1569_v56, %v1569_v56  ;;  %v1596_v4 = vld [vmem:[%s1402_s5 + $0xb8] sm:$0xff]  ;;  %v273_v12 = vmul.f32 %v1593_v3, %v1593_v3 }
  0x23   : > { %1115 = vmatpush.xpose.msk.msra.mxu3 %vm330_vm0, %v328_v15  ;;  %v1551_v50 = vld [vmem:[%s1402_s5 + $0x148] sm:$0xff]  ;;  %v291_v53 = vmul.f32 %v1548_v49, %v1548_v49  ;;  %v1575_v58 = vld [vmem:[%s1402_s5 + $0x140] sm:$0xff]  ;;  %v290_v61 = vmul.f32 %v1572_v57, %v1572_v57  ;;  %v1599_v5 = vld [vmem:[%s1402_s5 + $0x138] sm:$0xff]  ;;  %v289_v13 = vmul.f32 %v1596_v4, %v1596_v4 }
  0x24   : > { %1065 = vmatpush.xpose.msk.msra.mxu0 %vm330_vm0, %v279_v20  ;;  %v1554_v51 = vld [vmem:[%s1402_s5 + $0x1c8] sm:$0xff]  ;;  %v307_v54 = vmul.f32 %v1551_v50, %v1551_v50  ;;  %v1578_v59 = vld [vmem:[%s1402_s5 + $0x1c0] sm:$0xff]  ;;  %v306_v62 = vmul.f32 %v1575_v58, %v1575_v58  ;;  %v1602_v9 = vld [vmem:[%s1402_s5 + $0x1b8] sm:$0xff]  ;;  %v305_v14 = vmul.f32 %v1599_v5, %v1599_v5 }
  0x25   : > { %1082 = vmatpush.xpose.msk.msra.mxu1 %vm330_vm0, %v295_v21  ;;  %v323_v55 = vmul.f32 %v1554_v51, %v1554_v51  ;;  %v322_v63 = vmul.f32 %v1578_v59, %v1578_v59  ;;  %v321_v15 = vmul.f32 %v1602_v9, %v1602_v9  ;;  %v1617_v20 = vld [vmem:[%s1402_s5 + $0x30] sm:$0xff] }
  0x26   : > { %1099 = vmatpush.xpose.msk.msra.mxu2 %vm330_vm0, %v311_v22  ;;  %v1620_v21 = vld [vmem:[%s1402_s5 + $0xb0] sm:$0xff] }
  0x27   : > { %1116 = vmatpush.xpose.msk.msra.mxu3 %vm330_vm0, %v327_v23  ;;  %v1623_v22 = vld [vmem:[%s1402_s5 + $0x130] sm:$0xff] }
  0x28   : > { %1066 = vmatpush.xpose.msk.msra.mxu0 %vm330_vm0, %v278_v28  ;;  %v1626_v23 = vld [vmem:[%s1402_s5 + $0x1b0] sm:$0xff]  ;;  %v272_v28 = vmul.f32 %v1617_v20, %v1617_v20 }
  0x29   : > { %1083 = vmatpush.xpose.msk.msra.mxu1 %vm330_vm0, %v294_v29  ;;  %v288_v29 = vmul.f32 %v1620_v21, %v1620_v21 }
  0x2a   : > { %1100 = vmatpush.xpose.msk.msra.mxu2 %vm330_vm0, %v310_v30  ;;  %v304_v30 = vmul.f32 %v1623_v22, %v1623_v22 }
  0x2b   : > { %1117 = vmatpush.xpose.msk.msra.mxu3 %vm330_vm0, %v326_v31  ;;  %v320_v31 = vmul.f32 %v1626_v23, %v1626_v23 }
  0x2c   : > { %1067 = vmatpush.xpose.msk.msra.mxu0 %vm330_vm0, %v277_v36  ;;  %v1641_v36 = vld [vmem:[%s1402_s5 + $0x28] sm:$0xff] }
  0x2d   : > { %1084 = vmatpush.xpose.msk.msra.mxu1 %vm330_vm0, %v293_v37  ;;  %v1644_v37 = vld [vmem:[%s1402_s5 + $0xa8] sm:$0xff] }
  0x2e   : > { %1101 = vmatpush.xpose.msk.msra.mxu2 %vm330_vm0, %v309_v38  ;;  %v1647_v38 = vld [vmem:[%s1402_s5 + $0x128] sm:$0xff] }
  0x2f   : > { %1118 = vmatpush.xpose.msk.msra.mxu3 %vm330_vm0, %v325_v39  ;;  %v1650_v39 = vld [vmem:[%s1402_s5 + $0x1a8] sm:$0xff] }
  0x30   : > { %1068 = vmatpush.xpose.msk.msra.mxu0 %vm330_vm0, %v276_v44  ;;  %v271_v44 = vmul.f32 %v1641_v36, %v1641_v36 }
  0x31   : > { %1085 = vmatpush.xpose.msk.msra.mxu1 %vm330_vm0, %v292_v45  ;;  %v287_v45 = vmul.f32 %v1644_v37, %v1644_v37 }
  0x32   : > { %1102 = vmatpush.xpose.msk.msra.mxu2 %vm330_vm0, %v308_v46  ;;  %v303_v46 = vmul.f32 %v1647_v38, %v1647_v38 }
  0x33   : > { %1119 = vmatpush.xpose.msk.msra.mxu3 %vm330_vm0, %v324_v47  ;;  %v319_v47 = vmul.f32 %v1650_v39, %v1650_v39 }
  0x34   : > { %1069 = vmatpush.xpose.msk.msra.mxu0 %vm330_vm0, %v275_v52  ;;  %v1665_v52 = vld [vmem:[%s1402_s5 + $0x20] sm:$0xff] }
  0x35   : > { %1086 = vmatpush.xpose.msk.msra.mxu1 %vm330_vm0, %v291_v53  ;;  %v1668_v53 = vld [vmem:[%s1402_s5 + $0xa0] sm:$0xff] }
  0x36   : > { %1103 = vmatpush.xpose.msk.msra.mxu2 %vm330_vm0, %v307_v54  ;;  %v1671_v54 = vld [vmem:[%s1402_s5 + $0x120] sm:$0xff] }
  0x37   : > { %1120 = vmatpush.xpose.msk.msra.mxu3 %vm330_vm0, %v323_v55  ;;  %v1674_v55 = vld [vmem:[%s1402_s5 + $0x1a0] sm:$0xff] }
  0x38   : > { %1070 = vmatpush.xpose.msk.msra.mxu0 %vm330_vm0, %v274_v60  ;;  %v270_v60 = vmul.f32 %v1665_v52, %v1665_v52 }
  0x39   : > { %1087 = vmatpush.xpose.msk.msra.mxu1 %vm330_vm0, %v290_v61  ;;  %v286_v61 = vmul.f32 %v1668_v53, %v1668_v53 }
  0x3a   : > { %1104 = vmatpush.xpose.msk.msra.mxu2 %vm330_vm0, %v306_v62  ;;  %v302_v62 = vmul.f32 %v1671_v54, %v1671_v54 }
  0x3b   : > { %1121 = vmatpush.xpose.msk.msra.mxu3 %vm330_vm0, %v322_v63  ;;  %v318_v63 = vmul.f32 %v1674_v55, %v1674_v55 }
  0x3c   : > { %1071 = vmatpush.xpose.msk.msra.mxu0 %vm330_vm0, %v273_v12  ;;  %v1689_v12 = vld [vmem:[%s1402_s5 + $0x18] sm:$0xff] }
  0x3d   : > { %1088 = vmatpush.xpose.msk.msra.mxu1 %vm330_vm0, %v289_v13  ;;  %v1692_v13 = vld [vmem:[%s1402_s5 + $0x98] sm:$0xff] }
  0x3e   : > { %1105 = vmatpush.xpose.msk.msra.mxu2 %vm330_vm0, %v305_v14  ;;  %v1695_v14 = vld [vmem:[%s1402_s5 + $0x118] sm:$0xff] }
  0x3f   : > { %1122 = vmatpush.xpose.msk.msra.mxu3 %vm330_vm0, %v321_v15  ;;  %v1698_v15 = vld [vmem:[%s1402_s5 + $0x198] sm:$0xff] }
  0x40   : > { %1072 = vmatpush.xpose.msk.msra.mxu0 %vm330_vm0, %v272_v28  ;;  %1988 = vst [vmem:[#allocation5_spill] sm:$0xff] %v1698_v15  ;;  %v269_v28 = vmul.f32 %v1689_v12, %v1689_v12 }
  0x41   : > { %1089 = vmatpush.xpose.msk.msra.mxu1 %vm330_vm0, %v288_v29  ;;  %v285_v29 = vmul.f32 %v1692_v13, %v1692_v13 }
  0x42   : > { %1106 = vmatpush.xpose.msk.msra.mxu2 %vm330_vm0, %v304_v30  ;;  %v301_v30 = vmul.f32 %v1695_v14, %v1695_v14 }
  0x43   : > { %1123 = vmatpush.xpose.msk.msra.mxu3 %vm330_vm0, %v320_v31  ;;  %v317_v31 = vmul.f32 %v1698_v15, %v1698_v15  ;;  %v1761_v15 = vld [vmem:[%s1402_s5] sm:$0xff] }
  0x44   : > { %1073 = vmatpush.xpose.msk.msra.mxu0 %vm330_vm0, %v271_v44  ;;  %v1713_v44 = vld [vmem:[%s1402_s5 + $0x10] sm:$0xff] }
  0x45   : > { %1090 = vmatpush.xpose.msk.msra.mxu1 %vm330_vm0, %v287_v45  ;;  %1989 = vst [vmem:[#allocation6_spill] sm:$0xff] %v1713_v44  ;;  %v1716_v45 = vld [vmem:[%s1402_s5 + $0x90] sm:$0xff] }
  0x46   : > { %1107 = vmatpush.xpose.msk.msra.mxu2 %vm330_vm0, %v303_v46  ;;  %1990 = vst [vmem:[#allocation7_spill] sm:$0xff] %v1716_v45  ;;  %v1719_v46 = vld [vmem:[%s1402_s5 + $0x110] sm:$0xff] }
  0x47   : > { %1124 = vmatpush.xpose.msk.msra.mxu3 %vm330_vm0, %v319_v47  ;;  %1991 = vst [vmem:[#allocation8_spill] sm:$0xff] %v1719_v46  ;;  %v1722_v47 = vld [vmem:[%s1402_s5 + $0x190] sm:$0xff] }
  0x48   : > { %1074 = vmatpush.xpose.msk.msra.mxu0 %vm330_vm0, %v270_v60  ;;  %1992 = vst [vmem:[#allocation9_spill] sm:$0xff] %v1722_v47  ;;  %v268_v60 = vmul.f32 %v1713_v44, %v1713_v44  ;;  %v1743_v44 = vld [vmem:[%s1402_s5 + $0x108] sm:$0xff] }
  0x49   : > { %1091 = vmatpush.xpose.msk.msra.mxu1 %vm330_vm0, %v286_v61  ;;  %v284_v61 = vmul.f32 %v1716_v45, %v1716_v45  ;;  %1994 = vst [vmem:[#allocation11_spill] sm:$0xff] %v1743_v44  ;;  %v1746_v45 = vld [vmem:[%s1402_s5 + $0x188] sm:$0xff] }
  0x4a   : > { %1108 = vmatpush.xpose.msk.msra.mxu2 %vm330_vm0, %v302_v62  ;;  %v300_v62 = vmul.f32 %v1719_v46, %v1719_v46  ;;  %1995 = vst [vmem:[#allocation12_spill] sm:$0xff] %v1746_v45  ;;  %v315_v46 = vmul.f32 %v1746_v45, %v1746_v45 }
  0x4b   : > { %1125 = vmatpush.xpose.msk.msra.mxu3 %vm330_vm0, %v318_v63  ;;  %v316_v63 = vmul.f32 %v1722_v47, %v1722_v47  ;;  %v299_v47 = vmul.f32 %v1743_v44, %v1743_v44 }
  0x4c   : > { %1075 = vmatpush.xpose.msk.msra.mxu0 %vm330_vm0, %v269_v28  ;;  %v1737_v28 = vld [vmem:[%s1402_s5 + $0x8] sm:$0xff] }
  0x4d   : > { %1092 = vmatpush.xpose.msk.msra.mxu1 %vm330_vm0, %v285_v29  ;;  %1993 = vst [vmem:[#allocation10_spill] sm:$0xff] %v1737_v28  ;;  %v1740_v29 = vld [vmem:[%s1402_s5 + $0x88] sm:$0xff] }
  0x4e   : > { %1109 = vmatpush.xpose.msk.msra.mxu2 %vm330_vm0, %v301_v30  ;;  %v267_v30 = vmul.f32 %v1737_v28, %v1737_v28  ;;  %v1770_v28 = vld [vmem:[%s1402_s5 + $0x180] sm:$0xff] }
  0x4f   : > { %1126 = vmatpush.xpose.msk.msra.mxu3 %vm330_vm0, %v317_v31  ;;  %v283_v31 = vmul.f32 %v1740_v29, %v1740_v29  ;;  %v314_v44 = vmul.f32 %v1770_v28, %v1770_v28 }
  0x50   : > { %1076 = vmatpush.xpose.msk.msra.mxu0 %vm330_vm0, %v268_v60  ;;  %v1764_v60 = vld [vmem:[%s1402_s5 + $0x80] sm:$0xff] }
  0x51   : > { %1093 = vmatpush.xpose.msk.msra.mxu1 %vm330_vm0, %v284_v61  ;;  %v1767_v61 = vld [vmem:[%s1402_s5 + $0x100] sm:$0xff]  ;;  %s1276_s5 = scalar_lea.hbm %s1275_s30, 4 }
  0x52   : > { %1110 = vmatpush.xpose.msk.msra.mxu2 %vm330_vm0, %v300_v62  ;;  %v266_v62 = vmul.f32 %v1761_v15, %v1761_v15  ;;  %v298_v45 = vmul.f32 %v1767_v61, %v1767_v61  ;;  %p1277_p11 = scmp.ne.s32.totalorder %s1275_s30, %s1276_s5  ;;  %p1282_p1 = scmp.lt.s32.totalorder %s1280_s8, %s1276_s5 }
  0x53   : > { %1127 = vmatpush.xpose.msk.msra.mxu3 %vm330_vm0, %v316_v63  ;;  %v282_v63 = vmul.f32 %v1764_v60, %v1764_v60 }
  0x54   : > { %1077 = vmatpush.xpose.msk.msra.mxu0 %vm330_vm0, %v267_v30  ;;  %p1278_p12 = pnand %p1277_p11, %p1388_p5  ;;  %p1283_p2 = por %p1282_p1, %p1281_p0 }
  0x55   : > { %1094 = vmatpush.xpose.msk.msra.mxu1 %vm330_vm0, %v283_v31 }
  0x56   : > { %1111 = vmatpush.xpose.msk.msra.mxu2 %vm330_vm0, %v299_v47  ;;  %p1279_p13 = pneg %p1278_p12 }
  0x57   : > { %1128 = vmatpush.xpose.msk.msra.mxu3 %vm330_vm0, %v315_v46 }
  0x58   : > { %1078 = vmatpush.xpose.msk.msra.mxu0 %vm330_vm0, %v266_v62  ;;  %p1284_p3 = pnand %p1283_p2, %p1279_p13 }
  0x59   : > { %1095 = vmatpush.xpose.msk.msra.mxu1 %vm330_vm0, %v282_v63 }
  0x5a   : > { %1112 = vmatpush.xpose.msk.msra.mxu2 %vm330_vm0, %v298_v45 }
  0x5b   : > { %1129 = vmatpush.xpose.msk.msra.mxu3 %vm330_vm0, %v314_v44 }
  0x5c   : > { %1131 = vmatpush.xpose.msk.msrb.mxu0 %vm330_vm0, %v1405_v0  ;;  %v200_v0 = vld [vmem:[%s1975_s2] sm:$0xff] }
  0x5d   : > { %1148 = vmatpush.xpose.msk.msrb.mxu1 %vm330_vm0, %v1408_v1  ;;  %1079 = vmatmul.msk.f32.vlgmr.msra.gmra.mxu0 %vm330_vm0, %v200_v0  ;;  %v201_v1 = vld [vmem:[%s1976_s3] sm:$0xff] }
  0x5e   : > { %1165 = vmatpush.xpose.msk.msrb.mxu2 %vm330_vm0, %v1411_v2  ;;  %1096 = vmatmul.msk.f32.vlgmr.msra.gmra.mxu1 %vm330_vm0, %v200_v0  ;;  %v1324_v2 = vmov 0  }
  0x5f   : > { %1182 = vmatpush.xpose.msk.msrb.mxu3 %vm330_vm0, %v1420_v6  ;;  %1113 = vmatmul.msk.f32.vlgmr.msra.gmra.mxu2 %vm330_vm0, %v200_v0  ;;  %v1996_v6 = vld [vmem:[#allocation5_spill] sm:$0xff] }
  0x60   : > { %1132 = vmatpush.xpose.msk.msrb.mxu0 %vm330_vm0, %v1423_v7  ;;  %1130 = vmatmul.msk.f32.vlgmr.msra.gmra.mxu3 %vm330_vm0, %v200_v0  ;;  %v1997_v7 = vld [vmem:[#allocation6_spill] sm:$0xff] }
  0x61   : > { %1149 = vmatpush.xpose.msk.msrb.mxu1 %vm330_vm0, %v1426_v8  ;;  %1243 = vset.pattern.permute.xlu0 %v1324_v2  ;;  %v1998_v8 = vld [vmem:[#allocation7_spill] sm:$0xff] }
  0x62   : > { %1166 = vmatpush.xpose.msk.msrb.mxu2 %vm330_vm0, %v1431_v10  ;;  %883 = vperm.xlu0 %1243, %v201_v1   ;;  %v1999_v10 = vld [vmem:[#allocation8_spill] sm:$0xff] }
  0x63   : > { %1183 = vmatpush.xpose.msk.msrb.mxu3 %vm330_vm0, %v1434_v11  ;;  %v2000_v11 = vld [vmem:[#allocation9_spill] sm:$0xff] }
  0x64   : > { %1133 = vmatpush.xpose.msk.msrb.mxu0 %vm330_vm0, %v1449_v16  ;;  %v2001_v16 = vld [vmem:[#allocation10_spill] sm:$0xff] }
  0x65   : > { %1150 = vmatpush.xpose.msk.msrb.mxu1 %vm330_vm0, %v1452_v17  ;;  %v2002_v17 = vld [vmem:[#allocation11_spill] sm:$0xff] }
  0x66   : > { %1167 = vmatpush.xpose.msk.msrb.mxu2 %vm330_vm0, %v1455_v18  ;;  %v2003_v18 = vld [vmem:[#allocation12_spill] sm:$0xff] }
  0x67   : > { %1184 = vmatpush.xpose.msk.msrb.mxu3 %vm330_vm0, %v1458_v19  ;;  %v199_v19 = vld [vmem:[%s1974_s1] sm:$0xff] }
  0x68   : > { %1134 = vmatpush.xpose.msk.msrb.mxu0 %vm330_vm0, %v1473_v24 }
  0x69   : > { %1151 = vmatpush.xpose.msk.msrb.mxu1 %vm330_vm0, %v1476_v25 }
  0x6a   : > { %1168 = vmatpush.xpose.msk.msrb.mxu2 %vm330_vm0, %v1479_v26 }
  0x6b   : > { %1185 = vmatpush.xpose.msk.msrb.mxu3 %vm330_vm0, %v1482_v27 }
  0x6c   : > { %1135 = vmatpush.xpose.msk.msrb.mxu0 %vm330_vm0, %v1497_v32 }
  0x6d   : > { %1152 = vmatpush.xpose.msk.msrb.mxu1 %vm330_vm0, %v1500_v33 }
  0x6e   : > { %1169 = vmatpush.xpose.msk.msrb.mxu2 %vm330_vm0, %v1503_v34 }
  0x6f   : > { %1186 = vmatpush.xpose.msk.msrb.mxu3 %vm330_vm0, %v1506_v35 }
  0x70   : > { %1136 = vmatpush.xpose.msk.msrb.mxu0 %vm330_vm0, %v1521_v40 }
  0x71   : > { %1153 = vmatpush.xpose.msk.msrb.mxu1 %vm330_vm0, %v1524_v41 }
  0x72   : > { %1170 = vmatpush.xpose.msk.msrb.mxu2 %vm330_vm0, %v1527_v42 }
  0x73   : > { %1187 = vmatpush.xpose.msk.msrb.mxu3 %vm330_vm0, %v1530_v43 }
  0x74   : > { %1137 = vmatpush.xpose.msk.msrb.mxu0 %vm330_vm0, %v1545_v48 }
  0x75   : > { %1154 = vmatpush.xpose.msk.msrb.mxu1 %vm330_vm0, %v1548_v49 }
  0x76   : > { %1171 = vmatpush.xpose.msk.msrb.mxu2 %vm330_vm0, %v1551_v50 }
  0x77   : > { %1188 = vmatpush.xpose.msk.msrb.mxu3 %vm330_vm0, %v1554_v51 }
  0x78   : > { %1138 = vmatpush.xpose.msk.msrb.mxu0 %vm330_vm0, %v1569_v56 }
  0x79   : > { %1155 = vmatpush.xpose.msk.msrb.mxu1 %vm330_vm0, %v1572_v57 }
  0x7a   : > { %1172 = vmatpush.xpose.msk.msrb.mxu2 %vm330_vm0, %v1575_v58 }
  0x7b   : > { %1189 = vmatpush.xpose.msk.msrb.mxu3 %vm330_vm0, %v1578_v59 }
  0x7c   : > { %1139 = vmatpush.xpose.msk.msrb.mxu0 %vm330_vm0, %v1593_v3 }
  0x7d   : > { %1156 = vmatpush.xpose.msk.msrb.mxu1 %vm330_vm0, %v1596_v4 }
  0x7e   : > { %1173 = vmatpush.xpose.msk.msrb.mxu2 %vm330_vm0, %v1599_v5 }
  0x7f   : > { %1190 = vmatpush.xpose.msk.msrb.mxu3 %vm330_vm0, %v1602_v9 }
  0x80   : > { %1140 = vmatpush.xpose.msk.msrb.mxu0 %vm330_vm0, %v1617_v20 }
  0x81   : > { %1157 = vmatpush.xpose.msk.msrb.mxu1 %vm330_vm0, %v1620_v21 }
  0x82   : > { %1174 = vmatpush.xpose.msk.msrb.mxu2 %vm330_vm0, %v1623_v22 }
  0x83   : > { %1191 = vmatpush.xpose.msk.msrb.mxu3 %vm330_vm0, %v1626_v23 }
  0x84   : > { %1141 = vmatpush.xpose.msk.msrb.mxu0 %vm330_vm0, %v1641_v36 }
  0x85   : > { %1158 = vmatpush.xpose.msk.msrb.mxu1 %vm330_vm0, %v1644_v37 }
  0x86   : > { %1175 = vmatpush.xpose.msk.msrb.mxu2 %vm330_vm0, %v1647_v38 }
  0x87   : > { %1192 = vmatpush.xpose.msk.msrb.mxu3 %vm330_vm0, %v1650_v39 }
  0x88   : > { %1142 = vmatpush.xpose.msk.msrb.mxu0 %vm330_vm0, %v1665_v52 }
  0x89   : > { %1159 = vmatpush.xpose.msk.msrb.mxu1 %vm330_vm0, %v1668_v53 }
  0x8a   : > { %1176 = vmatpush.xpose.msk.msrb.mxu2 %vm330_vm0, %v1671_v54 }
  0x8b   : > { %1193 = vmatpush.xpose.msk.msrb.mxu3 %vm330_vm0, %v1674_v55 }
  0x8c   : > { %1143 = vmatpush.xpose.msk.msrb.mxu0 %vm330_vm0, %v1689_v12 }
  0x8d   : > { %1160 = vmatpush.xpose.msk.msrb.mxu1 %vm330_vm0, %v1692_v13 }
  0x8e   : > { %1177 = vmatpush.xpose.msk.msrb.mxu2 %vm330_vm0, %v1695_v14 }
  0x8f   : > { %1194 = vmatpush.xpose.msk.msrb.mxu3 %vm330_vm0, %v1996_v6 }
  0x90   : > { %1144 = vmatpush.xpose.msk.msrb.mxu0 %vm330_vm0, %v1997_v7 }
  0x91   : > { %1161 = vmatpush.xpose.msk.msrb.mxu1 %vm330_vm0, %v1998_v8 }
  0x92   : > { %1178 = vmatpush.xpose.msk.msrb.mxu2 %vm330_vm0, %v1999_v10 }
  0x93   : > { %1195 = vmatpush.xpose.msk.msrb.mxu3 %vm330_vm0, %v2000_v11 }
  0x94   : > { %1145 = vmatpush.xpose.msk.msrb.mxu0 %vm330_vm0, %v2001_v16 }
  0x95   : > { %1162 = vmatpush.xpose.msk.msrb.mxu1 %vm330_vm0, %v1740_v29 }
  0x96   : > { %1179 = vmatpush.xpose.msk.msrb.mxu2 %vm330_vm0, %v2002_v17 }
  0x97   : > { %1196 = vmatpush.xpose.msk.msrb.mxu3 %vm330_vm0, %v2003_v18 }
  0x98   : > { %1146 = vmatpush.xpose.msk.msrb.mxu0 %vm330_vm0, %v1761_v15 }
  0x99   : > { %1163 = vmatpush.xpose.msk.msrb.mxu1 %vm330_vm0, %v1764_v60 }
  0x9a   : > { %1180 = vmatpush.xpose.msk.msrb.mxu2 %vm330_vm0, %v1767_v61 }
  0x9b   : > { %1197 = vmatpush.xpose.msk.msrb.mxu3 %vm330_vm0, %v1770_v28  ;;  %1147 = vmatmul.msk.f32.vlgmr.msrb.gmra.mxu0 %vm330_vm0, %v199_v19 }
  0x9c   : > { %1164 = vmatmul.msk.f32.vlgmr.msrb.gmra.mxu1 %vm330_vm0, %v199_v19 }
  0x9d   : > { %1181 = vmatmul.msk.f32.vlgmr.msrb.gmra.mxu2 %vm330_vm0, %v199_v19 }
  0x9e   : > { %1198 = vmatmul.msk.f32.vlgmr.msrb.gmra.mxu3 %vm330_vm0, %v199_v19 }
  0xd4   : > { %v884_v32 = vpop.permute.xlu0 %883 }
  0xda   : > { %v543_v24 = vpop.f32.mrf.mxu0 }
  0xdb   : > { %v563_v25 = vpop.f32.mrf.mxu1 }
  0xe2   : > { %v583_v26 = vpop.f32.mrf.mxu2 }
  0xe3   : > { %v603_v27 = vpop.f32.mrf.mxu3 }
 0x118   : > { %v818_v33 = vpop.f32.mrf.mxu0 }
 0x119   : > { %v838_v34 = vpop.f32.mrf.mxu1  ;;  %v819_v35 = vadd.f32 %v818_v33, %v543_v24 }
 0x11a   : > { %v839_v40 = vadd.f32 %v838_v34, %v563_v25 }
 0x11b   : > { %v886_v41 = vadd.f32 %v884_v32, %v819_v35 }
 0x11c   : > { %v887_v42 = vadd.f32 %v884_v32, %v839_v40 }
 0x11d   : > { %v890_v43 = vrot.slane %v886_v41, 4 }
 0x11e   : > { %v896_v48 = vrot.slane %v887_v42, 4 }
 0x11f   : > { %v891_v49 = vmax.f32 %v886_v41, %v890_v43 }
 0x120   : > { %v897_v50 = vmax.f32 %v887_v42, %v896_v48  ;;  %v858_v51 = vpop.f32.mrf.mxu2 }
 0x121   : > { %v878_v56 = vpop.f32.mrf.mxu3  ;;  %v859_v57 = vadd.f32 %v858_v51, %v583_v26  ;;  %v892_v59 = vrot.slane %v891_v49, 2 }
 0x122   : > { %v879_v58 = vadd.f32 %v878_v56, %v603_v27  ;;  %v898_v3 = vrot.slane %v897_v50, 2 }
 0x123   : > { %v888_v4 = vadd.f32 %v884_v32, %v859_v57  ;;  %v893_v9 = vmax.f32 %v891_v49, %v892_v59 }
 0x124   : > { %v889_v5 = vadd.f32 %v884_v32, %v879_v58  ;;  %v899_v20 = vmax.f32 %v897_v50, %v898_v3 }
 0x125   : > { %v902_v21 = vrot.slane %v888_v4, 4  ;;  %v894_v23 = vrot.slane %v893_v9, 1 }
 0x126   : > { %v908_v22 = vrot.slane %v889_v5, 4  ;;  %v900_v36 = vrot.slane %v899_v20, 1 }
 0x127   : > { %v903_v37 = vmax.f32 %v888_v4, %v902_v21  ;;  %v1933_v39 = vmax.f32 %v893_v9, %v894_v23  ;;  %v976_v9 = vlaneseq }
 0x128   : > { %v909_v38 = vmax.f32 %v889_v5, %v908_v22  ;;  %v901_v52 = vmax.f32 %v899_v20, %v900_v36 }
 0x129   : > { %v904_v53 = vrot.slane %v903_v37, 2  ;;  %v914_v55 = vsub.f32 %v886_v41, %v1933_v39  ;;  %vm978_vm4 = vcmp.lt.s32.totalorder %v976_v9, 512 }
 0x12a   : > { %v910_v54 = vrot.slane %v909_v38, 2  ;;  %v915_v12 = vsub.f32 %v887_v42, %v901_v52 }
 0x12b   : > { %v905_v13 = vmax.f32 %v903_v37, %v904_v53  ;;  %v918_v15 = vmul.f32 1.442695, %v914_v55 }
 0x12c   : > { %v911_v14 = vmax.f32 %v909_v38, %v910_v54  ;;  %v920_v44 = vmul.f32 1.442695, %v915_v12 }
 0x12d   : > { %v906_v45 = vrot.slane %v905_v13, 1  ;;  %1244 = vpow2.f32 %v918_v15 }
 0x12e   : > { %v912_v46 = vrot.slane %v911_v14, 1  ;;  %1246 = vpow2.f32 %v920_v44 }
 0x12f   : > { %v907_v47 = vmax.f32 %v905_v13, %v906_v45 }
 0x130   : > { %v913_v28 = vmax.f32 %v911_v14, %v912_v46 }
 0x131   : > { %v916_v29 = vsub.f32 %v888_v4, %v907_v47 }
 0x132   : > { %v917_v30 = vsub.f32 %v889_v5, %v913_v28 }
 0x133   : > { %v922_v31 = vmul.f32 1.442695, %v916_v29  ;;  %v1245_v61 = vpop.eup %1244 }
 0x134   : > { %v924_v60 = vmul.f32 1.442695, %v917_v30  ;;  %v1247_v62 = vpop.eup %1246  ;;  %v926_v63 = vrot.slane %v1245_v61, 4 }
 0x135   : > { %1248 = vpow2.f32 %v922_v31  ;;  %v932_v0 = vrot.slane %v1247_v62, 4 }
 0x136   : > { %1250 = vpow2.f32 %v924_v60  ;;  %v927_v1 = vadd.f32 %v1245_v61, %v926_v63 }
 0x137   : > { %v933_v2 = vadd.f32 %v1247_v62, %v932_v0 }
 0x138   : > { %v928_v6 = vrot.slane %v927_v1, 2 }
 0x139   : > { %v934_v7 = vrot.slane %v933_v2, 2 }
 0x13a   : > { %v929_v10 = vadd.f32 %v928_v6, %v927_v1 }
 0x13b   : > { %v1249_v8 = vpop.eup %1248  ;;  %v935_v16 = vadd.f32 %v934_v7, %v933_v2 }
 0x13c   : > { %v1251_v11 = vpop.eup %1250  ;;  %v938_v17 = vrot.slane %v1249_v8, 4  ;;  %v930_v25 = vrot.slane %v929_v10, 1 }
 0x13d   : > { %v944_v18 = vrot.slane %v1251_v11, 4  ;;  %v936_v19 = vrot.slane %v935_v16, 1 }
 0x13e   : > { %v939_v24 = vadd.f32 %v1249_v8, %v938_v17  ;;  %v931_v35 = vadd.f32 %v930_v25, %v929_v10 }
 0x13f   : > { %v945_v26 = vadd.f32 %v1251_v11, %v944_v18  ;;  %v937_v27 = vadd.f32 %v936_v19, %v935_v16 }
 0x140   : > { %v940_v32 = vrot.slane %v939_v24, 2 }
 0x141   : > { %v946_v33 = vrot.slane %v945_v26, 2  ;;  %1252 = vlog2.f32 %v937_v27 }
 0x142   : > { %v941_v34 = vadd.f32 %v940_v32, %v939_v24  ;;  %1254 = vlog2.f32 %v931_v35 }
 0x143   : > { %v947_v40 = vadd.f32 %v946_v33, %v945_v26 }
 0x144   : > { %v942_v41 = vrot.slane %v941_v34, 1 }
 0x145   : > { %v948_v42 = vrot.slane %v947_v40, 1 }
 0x146   : > { %v943_v43 = vadd.f32 %v942_v41, %v941_v34 }
 0x147   : > { %v949_v48 = vadd.f32 %v948_v42, %v947_v40  ;;  %v1253_v49 = vpop.eup %1252 }
 0x148   : > { %1256 = vlog2.f32 %v943_v43  ;;  %v953_v50 = vmul.f32 0.6931472, %v1253_v49  ;;  %v1255_v51 = vpop.eup %1254 }
 0x149   : > { %1258 = vlog2.f32 %v949_v48  ;;  %v951_v3 = vmul.f32 0.6931472, %v1255_v51 }
 0x14a   : > { %v959_v57 = vadd.f32 %v953_v50, %v901_v52 }
 0x14b   : > { %v958_v23 = vadd.f32 %v951_v3, %v1933_v39 }
 0x14c   : > { %v966_v21 = vrot.slane %v959_v57, 7 }
 0x14e   : > { %v1257_v56 = vpop.eup %1256  ;;  %v970_v37 = vsel %vm969_vm1, %v958_v23, %v966_v21 }
 0x14f   : > { %v1259_v58 = vpop.eup %1258  ;;  %v955_v59 = vmul.f32 0.6931472, %v1257_v56 }
 0x150   : > { %v957_v4 = vmul.f32 0.6931472, %v1259_v58 }
 0x151   : > { %v960_v5 = vadd.f32 %v955_v59, %v907_v47 }
 0x152   : > { %v961_v20 = vadd.f32 %v957_v4, %v913_v28 }
 0x153   : > { %v967_v22 = vrot.slane %v960_v5, 6 }
 0x154   : > { %v968_v36 = vrot.slane %v961_v20, 5 }
 0x156   : > { %v972_v38 = vsel %vm971_vm2, %v967_v22, %v968_v36 }
 0x157   : > { %v974_v52 = vsel %vm973_vm3, %v970_v37, %v972_v38 }
 0x158   : > { %980 = vst.msk [vmem:[%s191_s27] sm:$0xf] %vm978_vm4, %v974_v52 }
 0x159   : > { %1287 = shalt.err (!%p1284_p3)
}
 0x15a   : > { %1203 = dma.vmem_to_hbm [thread:$0]  (%p1388_p5), %s995_s19, 64, %s997_s28, %s982_s29  }
 0x15b PF: > { %p1209_p4 = scmp.ge.s32.totalorder %s1322_s18, 2  ;;  %s1008_s11 = sand.u32 1, %s1310_s15  }
 0x15c   : > { %s1009_s12 = scalar_lea.sflag [#allocation3], %s1008_s11 }
 0x15d   : > { %p1206_p7 = pnand %p1209_p4, %p1392_p6 }
 0x15f   : > { %p1207_p8 = pneg %p1206_p7 }
 0x161   : > { %1305 = dma.done.wait (%p1207_p8), %s1009_s12, 64  }
 0x162   : > { %1307 = vsyncadd (%p1207_p8), %s1009_s12, 4294967232  ;;  %p14_p9 = scmp.ge.s32.totalorder %s1375_s21, 6   ;;  %s2004_s15 = smov %s1314_s16 }
 0x163   : > { %s2005_s16 = smov %s1318_s17  ;;  %s2006_s17 = smov %s1386_s24 }
 0x164   : > { %s2007_s18 = smov %s1375_s21  ;;  %16 = sbr.rel (!%p14_p9) target bundleno = 3 (0x3), region = 71 }
 0x169   :  { %1015 = vsyncpa [#allocation3], 1 }
 0x16a   :  { %1017 = vsyncpa [#allocation3 + $0x1], 1 }

</bundles_post_ra>
